<compile_context>
chip_gen: v7x
topology: tpu7x:2x2x1
jax: 0.10.0
libtpu: 0.0.40
codegen_flags: <defaults>
</compile_context>

<pallas_src>
import jax
import jax.numpy as jnp
from jax.experimental import pallas as pl
from jax.experimental.pallas import tpu as pltpu

N_IN = 10    # fc1 in_features
N_HID = 5    # fc1 out_features / fc2 in_features
N_OUT = 1    # fc2 out_features
PACK = 8     # samples packed per sublane row (one f32 sublane group)


def simplenet_kernel(w1b_ref, b1b_ref, w2b_ref, b2b_ref, x_ref, o_ref):
    """One batch tile.

    x_ref : (TR, PACK*N_IN)  -- 8 samples per row, each sample's 10 features contiguous.
    o_ref : (TR, PACK*N_OUT) -- o[r, s] = output of sample PACK*r + s (flat batch order).
    Weights are pre-expanded block-diagonals so both layers are plain MXU dots.
    """
    x = x_ref[...].astype(jnp.float32)                                    # single read, bf16 upcast
    h = jnp.dot(x, w1b_ref[...], preferred_element_type=jnp.float32)     # (TR, 40)  MXU
    h = jnp.maximum(h + b1b_ref[...], 0.0)                               # bias + ReLU (VPU)
    y = jnp.dot(h, w2b_ref[...], preferred_element_type=jnp.float32)     # (TR, 8)   MXU
    o_ref[...] = (y + b2b_ref[...]).astype(o_ref.dtype)


def _expand_params(w1, b1, w2, b2):
    """Block-diagonal expansion so 8 packed samples share one MXU contraction."""
    eye = jnp.eye(PACK, dtype=jnp.float32)
    w1b = jnp.kron(eye, w1.T.astype(jnp.float32))                         # (80, 40)
    w2b = jnp.kron(eye, w2.T.astype(jnp.float32))                         # (40, 8)
    b1b = jnp.tile(b1.astype(jnp.float32).reshape(1, N_HID), (1, PACK))   # (1, 40)
    b2b = jnp.tile(b2.astype(jnp.float32).reshape(1, N_OUT), (1, PACK))   # (1, 8)
    return w1b, b1b, w2b, b2b


def _simplenet_pallas(x, w1, b1, w2, b2, *, samples_per_tile):
    B = x.shape[0]
    if x.dtype not in (jnp.float32, jnp.bfloat16):
        x = x.astype(jnp.float32)

    # Pad batch to a multiple of PACK only when needed; otherwise the reshape is free.
    rem = (-B) % PACK
    if rem:
        x = jnp.pad(x, ((0, rem), (0, 0)))
    R = (B + rem) // PACK
    x2d = x.reshape(R, PACK * N_IN)                 # free view: identical HBM layout

    # Row tile: ~samples_per_tile samples per grid step; rows must be a multiple of 8
    # unless the block covers the whole (possibly non-multiple-of-8) row dim.
    tr_default = max(8, (samples_per_tile // PACK) // 8 * 8)
    if R <= tr_default:
        tr = R                                      # single full block
    else:
        tr = tr_default                             # >=2 steps -> both v7x TCs busy
    grid = (pl.cdiv(R, tr),)

    w1b, b1b, w2b, b2b = _expand_params(w1, b1, w2, b2)

    out2d = pl.pallas_call(
        simplenet_kernel,
        out_shape=jax.ShapeDtypeStruct((R, PACK * N_OUT), jnp.float32),
        grid=grid,
        in_specs=[
            # Tiny expanded weights/biases: whole arrays resident in VMEM.
            pl.BlockSpec((PACK * N_IN, PACK * N_HID), lambda i: (0, 0)),   # w1b (80, 40)
            pl.BlockSpec((1, PACK * N_HID), lambda i: (0, 0)),             # b1b (1, 40)
            pl.BlockSpec((PACK * N_HID, PACK * N_OUT), lambda i: (0, 0)),  # w2b (40, 8)
            pl.BlockSpec((1, PACK * N_OUT), lambda i: (0, 0)),             # b2b (1, 8)
            # Streaming input: one contiguous (TR, 80) slab per step, double-buffered.
            pl.BlockSpec((tr, PACK * N_IN), lambda i: (i, 0)),
        ],
        out_specs=pl.BlockSpec((tr, PACK * N_OUT), lambda i: (i, 0)),
        compiler_params=pltpu.CompilerParams(
            dimension_semantics=("parallel",)),      # v7x: split grid across 2 TCs
        cost_estimate=pl.CostEstimate(
            flops=2 * (N_IN * N_HID + N_HID * N_OUT) * B,
            transcendentals=0,
            bytes_accessed=B * (N_IN * x.dtype.itemsize + N_OUT * 4)),
    )(w1b, b1b, w2b, b2b, x2d)

    out = out2d.reshape(-1, N_OUT)                  # free: flat order == batch order
    if rem:
        out = out[:B]
    return out


def simplenet_reference(x, w1, b1, w2, b2):
    """Plain-JAX forward with PyTorch-layout params (also the small-batch path)."""
    h = jnp.maximum(x @ w1.T + b1, 0.0)
    return h @ w2.T + b2


def simplenet_forward(x, w1, b1, w2, b2, *, samples_per_tile=16384,
                      min_pallas_batch=1024, use_pallas=None):
    # samples_per_tile: 16384 is a good default on v5e/v6e; use 32768-65536 on v7x
    # (still only a few MiB of double-buffered VMEM).  Keep it <= ~B/2 for large B so
    # the grid has >=2 steps and v7x's second TensorCore is not idle.
    B = x.shape[0]
    if use_pallas is None:
        use_pallas = B >= min_pallas_batch
    if not use_pallas:
        # Tiny batches are pure launch/pipeline overhead for Pallas; let XLA fuse.
        return simplenet_reference(x, w1, b1, w2, b2)
    return _simplenet_pallas(x, w1, b1, w2, b2, samples_per_tile=samples_per_tile)


def init_params(key):
    # PyTorch nn.Linear default init: U(-1/sqrt(fan_in), 1/sqrt(fan_in)),
    # PyTorch layout: weight (out, in), bias (out,).
    k1, k2, k3, k4 = jax.random.split(key, 4)
    bound1 = 1.0 / jnp.sqrt(float(N_IN))
    bound2 = 1.0 / jnp.sqrt(float(N_HID))
    w1 = jax.random.uniform(k1, (N_HID, N_IN), jnp.float32, -bound1, bound1)
    b1 = jax.random.uniform(k2, (N_HID,), jnp.float32, -bound1, bound1)
    w2 = jax.random.uniform(k3, (N_OUT, N_HID), jnp.float32, -bound2, bound2)
    b2 = jax.random.uniform(k4, (N_OUT,), jnp.float32, -bound2, bound2)
    return w1, b1, w2, b2


if __name__ == "__main__":
    key = jax.random.PRNGKey(0)
    kx, kp = jax.random.split(key)
    w1, b1, w2, b2 = init_params(kp)

    # Case 1: batch multiple of 8 (free-reshape path); small tile forces a multi-step
    # grid with a ragged final block to exercise the pipelined path.
    B1 = 1600
    x1 = jax.random.normal(kx, (B1, N_IN), jnp.float32)
    out1 = simplenet_forward(x1, w1, b1, w2, b2, samples_per_tile=512, use_pallas=True)
    jax.block_until_ready(out1)
    ref1 = simplenet_reference(x1, w1, b1, w2, b2)
    assert out1.shape == (B1, 1), out1.shape
    assert jnp.allclose(out1, ref1, atol=1e-5, rtol=1e-5)

    # Case 2: small ragged batch (B % 8 != 0 -> pad + slice path), single full block.
    B2 = 37
    x2 = jax.random.normal(jax.random.PRNGKey(1), (B2, N_IN), jnp.float32)
    out2 = simplenet_forward(x2, w1, b1, w2, b2, use_pallas=True)
    jax.block_until_ready(out2)
    ref2 = simplenet_reference(x2, w1, b1, w2, b2)
    assert out2.shape == (B2, 1), out2.shape
    assert jnp.allclose(out2, ref2, atol=1e-5, rtol=1e-5)

    print("KERNEL_OK")
</pallas_src>

<mosaic_0001>
module attributes {stable_mosaic.version = 11 : i64} {
  func.func @simplenet_kernel(%arg0: i32, %arg1: memref<80x40xf32, #tpu.memory_space<vmem>>, %arg2: memref<1x40xf32, #tpu.memory_space<vmem>>, %arg3: memref<40x8xf32, #tpu.memory_space<vmem>>, %arg4: memref<1x8xf32, #tpu.memory_space<vmem>>, %arg5: memref<64x80xf32, #tpu.memory_space<vmem>>, %arg6: memref<64x8xf32, #tpu.memory_space<vmem>>) attributes {dimension_semantics = [#tpu.dimension_semantics<parallel>], iteration_bounds = array<i64: 4>, scalar_prefetch = 0 : i64, scratch_operands = 0 : i64, tpu.core_type = #tpu.core_type<tc>, window_params = [{pipeline_mode = #tpu.pipeline_mode<synchronous>, transform_indices = @transform_0, window_bounds = array<i64: 80, 40>}, {pipeline_mode = #tpu.pipeline_mode<synchronous>, transform_indices = @transform_1, window_bounds = array<i64: 1, 40>}, {pipeline_mode = #tpu.pipeline_mode<synchronous>, transform_indices = @transform_2, window_bounds = array<i64: 40, 8>}, {pipeline_mode = #tpu.pipeline_mode<synchronous>, transform_indices = @transform_3, window_bounds = array<i64: 1, 8>}, {transform_indices = @transform_4, window_bounds = array<i64: 64, 80>}, {transform_indices = @transform_5, window_bounds = array<i64: 64, 8>}]} {
    %c0 = arith.constant 0 : index
    %c0_0 = arith.constant 0 : index
    %0 = vector.load %arg5[%c0, %c0_0] : memref<64x80xf32, #tpu.memory_space<vmem>>, vector<64x80xf32>
    %c0_1 = arith.constant 0 : index
    %c0_2 = arith.constant 0 : index
    %1 = vector.load %arg1[%c0_1, %c0_2] : memref<80x40xf32, #tpu.memory_space<vmem>>, vector<80x40xf32>
    %cst = arith.constant dense<0.000000e+00> : vector<64x40xf32>
    %2 = tpu.matmul %0, %1, %cst {dimension_numbers = #tpu.dot_dimension_numbers<[1], [0], [0], [1], [0, 0, 1, 1], [], []>} : vector<64x80xf32>, vector<80x40xf32>, vector<64x40xf32> -> vector<64x40xf32>
    %c0_3 = arith.constant 0 : index
    %c0_4 = arith.constant 0 : index
    %3 = vector.load %arg2[%c0_3, %c0_4] : memref<1x40xf32, #tpu.memory_space<vmem>>, vector<1x40xf32>
    %4 = vector.broadcast %3 : vector<1x40xf32> to vector<64x40xf32>
    %5 = arith.addf %2, %4 : vector<64x40xf32>
    %cst_5 = arith.constant 0.000000e+00 : f32
    %6 = vector.broadcast %cst_5 : f32 to vector<64x40xf32>
    %7 = arith.maximumf %5, %6 : vector<64x40xf32>
    %c0_6 = arith.constant 0 : index
    %c0_7 = arith.constant 0 : index
    %8 = vector.load %arg3[%c0_6, %c0_7] : memref<40x8xf32, #tpu.memory_space<vmem>>, vector<40x8xf32>
    %cst_8 = arith.constant dense<0.000000e+00> : vector<64x8xf32>
    %9 = tpu.matmul %7, %8, %cst_8 {dimension_numbers = #tpu.dot_dimension_numbers<[1], [0], [0], [1], [0, 0, 1, 1], [], []>} : vector<64x40xf32>, vector<40x8xf32>, vector<64x8xf32> -> vector<64x8xf32>
    %c0_9 = arith.constant 0 : index
    %c0_10 = arith.constant 0 : index
    %10 = vector.load %arg4[%c0_9, %c0_10] : memref<1x8xf32, #tpu.memory_space<vmem>>, vector<1x8xf32>
    %11 = vector.broadcast %10 : vector<1x8xf32> to vector<64x8xf32>
    %12 = arith.addf %9, %11 : vector<64x8xf32>
    %c0_11 = arith.constant 0 : index
    %c0_12 = arith.constant 0 : index
    %13 = vector.load %arg6[%c0_11, %c0_12] : memref<64x8xf32, #tpu.memory_space<vmem>>, vector<64x8xf32>
    tpu.vector_store %arg6[%c0_11, %c0_12], %12 {strides = array<i32>} : memref<64x8xf32, #tpu.memory_space<vmem>>, vector<64x8xf32>,
    return
  }
  func.func @transform_0(%arg0: i32) -> (i32, i32) {
    %c0_i32 = arith.constant 0 : i32
    %c0_i32_0 = arith.constant 0 : i32
    %c0_i32_1 = arith.constant 0 : i32
    return %c0_i32, %c0_i32_0 : i32, i32
  }
  func.func @transform_1(%arg0: i32) -> (i32, i32) {
    %c0_i32 = arith.constant 0 : i32
    %c0_i32_0 = arith.constant 0 : i32
    %c0_i32_1 = arith.constant 0 : i32
    return %c0_i32, %c0_i32_0 : i32, i32
  }
  func.func @transform_2(%arg0: i32) -> (i32, i32) {
    %c0_i32 = arith.constant 0 : i32
    %c0_i32_0 = arith.constant 0 : i32
    %c0_i32_1 = arith.constant 0 : i32
    return %c0_i32, %c0_i32_0 : i32, i32
  }
  func.func @transform_3(%arg0: i32) -> (i32, i32) {
    %c0_i32 = arith.constant 0 : i32
    %c0_i32_0 = arith.constant 0 : i32
    %c0_i32_1 = arith.constant 0 : i32
    return %c0_i32, %c0_i32_0 : i32, i32
  }
  func.func @transform_4(%arg0: i32) -> (i32, i32) {
    %c0_i32 = arith.constant 0 : i32
    %c0_i32_0 = arith.constant 0 : i32
    return %arg0, %c0_i32 : i32, i32
  }
  func.func @transform_5(%arg0: i32) -> (i32, i32) {
    %c0_i32 = arith.constant 0 : i32
    %c0_i32_0 = arith.constant 0 : i32
    return %arg0, %c0_i32 : i32, i32
  }
}

</mosaic_0001>

<bundles_post_ra>
// kernel: tpu_custom_call.1
= control target key start
LH: loop header
LB: loop body
LE: loop exit
PB: predicated region body
PF: predicated region fallthrough
CT: control target
= control target key end

     0   :  { %s1167_s18 = smov 0   ;;  %s1169_s19 = smov 0   ;;  %s1351_s0 = inlined_call_operand.vmem [shape: f32[80,40], index: 0, kind: input, shape index: {}]   ;;  %s1352_s1 = inlined_call_operand.vmem [shape: f32[1,40], index: 1, kind: input, shape index: {}]   ;;  %s1353_s2 = inlined_call_operand.vmem [shape: f32[40,8], index: 2, kind: input, shape index: {}]   ;;  %s1354_s3 = inlined_call_operand.vmem [shape: f32[1,8], index: 3, kind: input, shape index: {}]   ;;  %s1355_s4 = inlined_call_operand.vmem [shape: f32[200,80], index: 4, kind: input, shape index: {}]   ;;  %s1356_s5 = inlined_call_operand.vmem [shape: f32[200,8], index: 5, kind: output, shape index: {}]  }
   0x1   :  { %s1171_s20 = smov 0  }
   0x2 LB: > { %s1180_s21 = sadd.s32 4294967295, %s1103_s20   ;;  %s1182_s22 = sadd.s32 1, %s1103_s20   ;;  %s1103_s20 = sphi %s1171_s20, %s1363_s20   ;;  %s1099_s19 = sphi %s1169_s19, %s1362_s19   ;;  %s1095_s18 = sphi %s1167_s18, %s1361_s18  }
   0x3   : > { %s129_s23 = ssub.s32 %s1103_s20, %s1182_s22  ;;  %s132_s24 = sadd.s32 1, %s1099_s19 }
   0x4   : > { %p130_p0 = scmp.eq.s32.totalorder %s129_s23, 0  ;;  %p142_p1 = scmp.ne.s32.totalorder %s1099_s19, %s1095_s18 }
   0x5   : > { %p143_p2 = scmp.eq.s32.totalorder %s1180_s21, 3  ;;  %p806_p3 = scmp.ge.s32.totalorder %s1103_s20, 1 }
   0x6   : > { %s1190_s25 = scalar_select %p130_p0, %s1099_s19, %s132_s24  }
   0x7   : > { %p1192_p4 = por %p143_p2, %p142_p1  ;;  %p196_p5 = scmp.lt.s32.totalorder %s1103_s20, 5 }
   0x9   : > { %p197_p6 = pnand %p806_p3, %p196_p5 }
   0xa   : > { %v254_v0 = vld [vmem:[%s1351_s0] sm:$0xff] (!%p197_p6)  ;;  %v255_v1 = vld [vmem:[%s1351_s0 + $0x8] sm:$0xff] (!%p197_p6)  ;;  %v256_v2 = vld [vmem:[%s1351_s0 + $0x10] sm:$0xff] (!%p197_p6)  ;;  %s1206_s8 = sshll.u32 (!%p197_p6), %s1180_s21, 3  ;;  %vm271_vm0 = vcmask (!%p197_p6), 654336   ;;  %vm421_vm1 = vcmask (!%p197_p6), 326656  }
   0xb   : > { %200 = sbr.rel (%p197_p6) target bundleno = 528 (0x210), region = 40  ;;  %v933_v3 = vpack.c.bf16 (!%p197_p6), %v255_v1, %v254_v0  ;;  %v257_v4 = vld [vmem:[%s1351_s0 + $0x18] sm:$0xff] (!%p197_p6)  ;;  %p232_p7 = scmp.lt.s32.totalorder (!%p197_p6), %s1206_s8, 24  ;;  %v258_v6 = vld [vmem:[%s1351_s0 + $0x20] sm:$0xff] (!%p197_p6)  ;;  %v259_v7 = vld [vmem:[%s1351_s0 + $0x28] sm:$0xff] (!%p197_p6)  ;;  %vm551_vm2 = vcmask (!%p197_p6), 64512  }
   0xc   : > { %v937_v5 = vpack.c.bf16 (!%p197_p6), %v257_v4, %v256_v2  ;;  %v409_v8 = vld [vmem:[%s1353_s2] sm:$0xff] (!%p197_p6)  ;;  %v410_v9 = vld [vmem:[%s1353_s2 + $0x8] sm:$0xff] (!%p197_p6)  ;;  %v941_v11 = vpack.c.bf16 (!%p197_p6), %v259_v7, %v258_v6  ;;  %v260_v12 = vld [vmem:[%s1351_s0 + $0x30] sm:$0xff] (!%p197_p6)  ;;  %s224_s28 = sand.u32 (!%p197_p6), 1, %s1095_s18  }
   0xd   : > { %934 = vmatprep.subr.bf16.mxu0 (!%p197_p6), %v933_v3  ;;  %v953_v10 = vpack.c.bf16 (!%p197_p6), %v410_v9, %v409_v8  ;;  %v261_v13 = vld [vmem:[%s1351_s0 + $0x38] sm:$0xff] (!%p197_p6)  ;;  %v262_v16 = vld [vmem:[%s1351_s0 + $0x40] sm:$0xff] (!%p197_p6)  ;;  %v263_v17 = vld [vmem:[%s1351_s0 + $0x48] sm:$0xff] (!%p197_p6)  ;;  %s807_s29 = sshll.u32 (!%p197_p6), %s224_s28, 6 }
   0xe   : > { %936 = vmatpush3.bf16.msra.mxu0 (!%p197_p6), %v933_v3  ;;  %v945_v15 = vpack.c.bf16 (!%p197_p6), %v261_v13, %v260_v12  ;;  %v949_v18 = vpack.c.bf16 (!%p197_p6), %v263_v17, %v262_v16  ;;  %v411_v26 = vld [vmem:[%s1353_s2 + $0x10] sm:$0xff] (!%p197_p6)  ;;  %v412_v27 = vld [vmem:[%s1353_s2 + $0x18] sm:$0xff] (!%p197_p6)  ;;  %v413_v29 = vld [vmem:[%s1353_s2 + $0x20] sm:$0xff] (!%p197_p6)  ;;  %s1272_s7 = scalar_lea.vmem (!%p197_p6), [#allocation2], %s807_s29  }
   0xf   : > { %938 = vmatprep.subr.bf16.mxu0 (!%p197_p6), %v937_v5  ;;  %954 = vmatprep.subr.bf16.mxu1 (!%p197_p6), %v953_v10  ;;  %v957_v28 = vpack.c.bf16 (!%p197_p6), %v412_v27, %v411_v26  ;;  %v810_v30 = vld [vmem:[%s1352_s1] ss:$0 sm:$0xff] (!%p197_p6) }
  0x10   : > { %956 = vmatpush3.bf16.msra.mxu1 (!%p197_p6), %v953_v10  ;;  %v819_v55 = vld [vmem:[%s1354_s3] ss:$0 sm:$0xff] (!%p197_p6) }
  0x11   : > { %958 = vmatprep.subr.bf16.mxu1 (!%p197_p6), %v957_v28 }
  0x12   : > { %s233_s15 = scalar_select %p232_p7, %s1206_s8, 24  ;;  %940 = vmatpush3.bf16.msra.mxu0 %v937_v5 }
  0x13   : > { %942 = vmatprep.subr.bf16.mxu0 %v941_v11  ;;  %s568_s18 = ssub.s32 (%p1192_p4), 25, %s1206_s8 }
  0x14   : > { %s809_s24 = sshll.u32 %s233_s15, 3  ;;  %960 = vmatpush3.bf16.msra.mxu1 %v957_v28  ;;  %p569_p8 = scmp.lt.s32.totalorder (%p1192_p4), %s568_s18, 8 }
  0x15   : > { %s235_s9 = scalar_lea.vmem %s1355_s4, %s809_s24  ;;  %919 = vmatprep.subr.mxu1 %v413_v29 }
  0x16   : > { %v246_v14 = vld [vmem:[%s235_s9] sm:$0xff]  ;;  %944 = vmatpush3.bf16.msra.mxu0 %v941_v11  ;;  %v247_v19 = vld [vmem:[%s235_s9 + $0x8] sm:$0xff]  ;;  %v248_v20 = vld [vmem:[%s235_s9 + $0x10] sm:$0xff] }
  0x17   : > { %899 = vmatprep.mubr.msk.f32.mxu0 %vm271_vm0, %v246_v14  ;;  %946 = vmatprep.subr.bf16.mxu0 %v945_v15  ;;  %v249_v21 = vld [vmem:[%s235_s9 + $0x18] sm:$0xff]  ;;  %v250_v22 = vld [vmem:[%s235_s9 + $0x20] sm:$0xff]  ;;  %v251_v23 = vld [vmem:[%s235_s9 + $0x28] sm:$0xff] }
  0x18   : > { %v252_v24 = vld [vmem:[%s235_s9 + $0x30] sm:$0xff]  ;;  %v253_v25 = vld [vmem:[%s235_s9 + $0x38] sm:$0xff]  ;;  %920 = vmatpush3.msra.mxu1 %v413_v29  ;;  %s845_s9 = sshll.u32 (%p1192_p4), %s1180_s21, 6 }
  0x19   : > { %s1297_s12 = scalar_lea.vmem (%p1192_p4), %s1356_s5, %s845_s9  }
  0x1a   : > { %948 = vmatpush3.bf16.msra.mxu0 %v945_v15 }
  0x1b   : > { %950 = vmatprep.subr.bf16.mxu0 %v949_v18 }
  0x1e   : > { %952 = vmatpush3.bf16.msra.mxu0 %v949_v18 }
  0x21   : > { %900 = vmatmul.mubr.msk.f32.vlgmr.msra.gmra.mrb[0].mxu0 %vm271_vm0, %v247_v19 }
  0x22   : > { %902 = vmatprep.mubr.msk.f32.mxu0 %vm271_vm0, %v248_v20 }
  0x25   : > { %903 = vmatmul.mubr.msk.f32.gmra.mrb[2].mxu0 %vm271_vm0, %v249_v21 }
  0x26   : > { %905 = vmatprep.mubr.msk.f32.mxu0 %vm271_vm0, %v250_v22 }
  0x29   : > { %906 = vmatmul.mubr.msk.f32.gmra.mrb[4].mxu0 %vm271_vm0, %v251_v23 }
  0x2a   : > { %908 = vmatprep.mubr.msk.f32.mxu0 %vm271_vm0, %v252_v24 }
  0x2d   : > { %909 = vmatmul.mubr.msk.f32.gmra.mrb[6].mxu0 %vm271_vm0, %v253_v25 }
  0xf4   : > { %v901_v31 = vpop.f32.mrb[0].mxu0 }
  0xf5   : > { %v368_v32 = vadd.f32 %v901_v31, %v810_v30  ;;  %v362_v33 = vpop.f32.mrb[1].mxu0 }
  0xf6   : > { %v363_v34 = vadd.f32 %v810_v30, %v362_v33 }
  0xf7   : > { %v402_v37 = vmax.f32 %v368_v32, 0.0 }
  0xf8   : > { %v401_v35 = vmax.f32 %v363_v34, 0.0  ;;  %v904_v36 = vpop.f32.mrb[2].mxu0 }
  0xf9   : > { %v378_v38 = vadd.f32 %v904_v36, %v810_v30  ;;  %v372_v39 = vpop.f32.mrb[3].mxu0 }
  0xfa   : > { %v373_v40 = vadd.f32 %v810_v30, %v372_v39  ;;  %921 = vmatprep.mubr.msk.f32.mxu1 %vm421_vm1, %v401_v35 }
  0xfb   : > { %922 = vmatmul.mubr.msk.f32.vlgmr.msra.gmra.mrb[0].mxu1 %vm421_vm1, %v402_v37  ;;  %v404_v43 = vmax.f32 %v378_v38, 0.0 }
  0xfc   : > { %v403_v41 = vmax.f32 %v373_v40, 0.0  ;;  %v907_v42 = vpop.f32.mrb[4].mxu0 }
  0xfd   : > { %v388_v44 = vadd.f32 %v907_v42, %v810_v30  ;;  %v382_v45 = vpop.f32.mrb[5].mxu0 }
  0xfe   : > { %v383_v46 = vadd.f32 %v810_v30, %v382_v45  ;;  %924 = vmatprep.mubr.msk.f32.mxu1 %vm421_vm1, %v403_v41 }
  0xff   : > { %925 = vmatmul.mubr.msk.f32.gmra.mrb[2].mxu1 %vm421_vm1, %v404_v43  ;;  %v406_v49 = vmax.f32 %v388_v44, 0.0 }
 0x100   : > { %v405_v47 = vmax.f32 %v383_v46, 0.0  ;;  %v910_v48 = vpop.f32.mrb[6].mxu0 }
 0x101   : > { %v398_v50 = vadd.f32 %v910_v48, %v810_v30  ;;  %v392_v51 = vpop.f32.mrb[7].mxu0 }
 0x102   : > { %v393_v52 = vadd.f32 %v810_v30, %v392_v51  ;;  %927 = vmatprep.mubr.msk.f32.mxu1 %vm421_vm1, %v405_v47 }
 0x103   : > { %928 = vmatmul.mubr.msk.f32.gmra.mrb[4].mxu1 %vm421_vm1, %v406_v49  ;;  %v408_v54 = vmax.f32 %v398_v50, 0.0 }
 0x104   : > { %v407_v53 = vmax.f32 %v393_v52, 0.0 }
 0x106   : > { %930 = vmatprep.mubr.msk.f32.mxu1 %vm421_vm1, %v407_v53 }
 0x107   : > { %931 = vmatmul.mubr.msk.f32.gmra.mrb[6].mxu1 %vm421_vm1, %v408_v54 }
 0x1ce   : > { %v923_v56 = vpop.f32.mrb[0].mxu1 }
 0x1cf   : > { %v518_v57 = vadd.f32 %v923_v56, %v819_v55  ;;  %v512_v58 = vpop.f32.mrb[1].mxu1 }
 0x1d0   : > { %v513_v59 = vadd.f32 %v819_v55, %v512_v58 }
 0x1d1   : > { %553 = vst.msk [vmem:[%s1272_s7 + $0x8] sm:$0xff] %vm551_vm2, %v518_v57 }
 0x1d2   : > { %552 = vst.msk [vmem:[%s1272_s7] sm:$0xff] %vm551_vm2, %v513_v59  ;;  %v926_v60 = vpop.f32.mrb[2].mxu1 }
 0x1d3   : > { %v528_v61 = vadd.f32 %v926_v60, %v819_v55  ;;  %v522_v62 = vpop.f32.mrb[3].mxu1 }
 0x1d4   : > { %v523_v63 = vadd.f32 %v819_v55, %v522_v62 }
 0x1d5   : > { %555 = vst.msk [vmem:[%s1272_s7 + $0x18] sm:$0xff] %vm551_vm2, %v528_v61 }
 0x1d6   : > { %554 = vst.msk [vmem:[%s1272_s7 + $0x10] sm:$0xff] %vm551_vm2, %v523_v63  ;;  %v929_v0 = vpop.f32.mrb[4].mxu1 }
 0x1d7   : > { %v538_v1 = vadd.f32 %v929_v0, %v819_v55  ;;  %v532_v2 = vpop.f32.mrb[5].mxu1 }
 0x1d8   : > { %v533_v3 = vadd.f32 %v819_v55, %v532_v2  ;;  %566 = sbr.rel (!%p1192_p4) target bundleno = 528 (0x210), region = 44 }
 0x1d9   : > { %557 = vst.msk [vmem:[%s1272_s7 + $0x28] sm:$0xff] %vm551_vm2, %v538_v1 }
 0x1da   : > { %556 = vst.msk [vmem:[%s1272_s7 + $0x20] sm:$0xff] %vm551_vm2, %v533_v3  ;;  %v932_v4 = vpop.f32.mrb[6].mxu1 }
 0x1db   : > { %v548_v5 = vadd.f32 %v932_v4, %v819_v55  ;;  %v542_v6 = vpop.f32.mrb[7].mxu1 }
 0x1dc   : > { %v543_v7 = vadd.f32 %v819_v55, %v542_v6 }
 0x1dd   : > { %559 = vst.msk [vmem:[%s1272_s7 + $0x38] sm:$0xff] %vm551_vm2, %v548_v5 }
 0x1de   : > { %558 = vst.msk [vmem:[%s1272_s7 + $0x30] sm:$0xff] %vm551_vm2, %v543_v7 }
 0x1df   : > { %s1365_s18 = smov (!%p569_p8, %s568_s18), 8 }
 0x1e0   : > { %s830_s13 = sshll.u32 %s1365_s18, 7 }
 0x1e1   : > { %p833_p9 = scmp.eq.s32.totalorder %s830_s13, 0 }
 0x1e2   : > { %s1303_s14 = sshrl.u32 (!%p833_p9), %s1365_s18, 3 }
 0x1e3   : > { %577 = sbr.rel (%p833_p9) target bundleno = 528 (0x210), region = 48  ;;  %p834_p10 = scmp.le.s32.totalorder (!%p833_p9), %s1303_s14, 0 }
 0x1ea   : > { %759 = sbr.rel (%p834_p10) target bundleno = 507 (0x1fb), region = 124  ;;  %s1358_s21 = smov (!%p834_p10), %s1297_s12 }
 0x1eb   : > { %s1359_s26 = smov (!%p834_p10), %s1272_s7  ;;  %s1312_s8 = smov (!%p834_p10), 0  }
 0x1ec   : > { %s1314_s15 = smov (!%p834_p10), 0  }
 0x1f1 LB: >> { %v653_v8 = vld [vmem:[%s1111_s26] sm:$0xff]  ;;  %v655_v9 = vld [vmem:[%s1111_s26 + $0x8] sm:$0xff]  ;;  %v657_v10 = vld [vmem:[%s1111_s26 + $0x10] sm:$0xff]  ;;  %s669_s16 = sadd.s32 1, %s1115_s8  ;;  %s647_s15 = sadd.s32 1, %s1119_s15   ;;  %s1119_s15 = sphi %s1314_s15, %s647_s15   ;;  %s1115_s8 = sphi %s1312_s8, %s1360_s8   ;;  %s1111_s26 = sphi %s1359_s26, %s674_s26   ;;  %s1107_s21 = sphi %s1358_s21, %s675_s21  }
 0x1f2   : >> { %654 = vst [vmem:[%s1107_s21] sm:$0xff] %v653_v8  ;;  %656 = vst [vmem:[%s1107_s21 + $0x8] sm:$0xff] %v655_v9  ;;  %v659_v11 = vld [vmem:[%s1111_s26 + $0x18] sm:$0xff]  ;;  %v661_v12 = vld [vmem:[%s1111_s26 + $0x20] sm:$0xff]  ;;  %p670_p11 = scmp.ge.s32.totalorder %s669_s16, %s1303_s14  ;;  %p646_p12 = scmp.ge.s32.totalorder %s647_s15, %s1303_s14 }
 0x1f3   : >> { %658 = vst [vmem:[%s1107_s21 + $0x10] sm:$0xff] %v657_v10  ;;  %v663_v13 = vld [vmem:[%s1111_s26 + $0x28] sm:$0xff]  ;;  %660 = vst [vmem:[%s1107_s21 + $0x18] sm:$0xff] %v659_v11  ;;  %v665_v14 = vld [vmem:[%s1111_s26 + $0x30] sm:$0xff] }
 0x1f4   : >> { %662 = vst [vmem:[%s1107_s21 + $0x20] sm:$0xff] %v661_v12  ;;  %664 = vst [vmem:[%s1107_s21 + $0x28] sm:$0xff] %v663_v13  ;;  %v667_v15 = vld [vmem:[%s1111_s26 + $0x38] sm:$0xff]  ;;  %s1367_s16 = smov (%p670_p11, %s669_s16), 0  ;;  %649 = sbr.rel (!%p646_p12) target bundleno = 497 (0x1f1), region = 130 }
 0x1f5   : >> { %666 = vst [vmem:[%s1107_s21 + $0x30] sm:$0xff] %v665_v14  ;;  %668 = vst [vmem:[%s1107_s21 + $0x38] sm:$0xff] %v667_v15  ;;  %s835_s17 = sshll.u32 %s1367_s16, 6  ;;  %s1360_s8 = smov %s1367_s16 }
 0x1f6   : >> { %s674_s26 = scalar_lea.vmem %s1272_s7, %s835_s17 [#allocation2]   ;;  %s675_s21 = scalar_lea.vmem %s1297_s12, %s835_s17  }
 0x1fb PF: > { %s1333_s20 = sand.u32 7, %s1365_s18   ;;  %s846_s23 = sshll.u32 %s1303_s14, 6 }
 0x1fc   : > { %s680_s24 = scalar_lea.vmem %s1272_s7, %s846_s23 [#allocation2]   ;;  %s682_s27 = scalar_lea.vmem %s1297_s12, %s846_s23  }
 0x1fd   : > { %p840_p13 = scmp.le.s32.totalorder %s1333_s20, 0 }
 0x1fe   : > { %s1121_s28 = smov (!%p840_p13), %s682_s27   ;;  %s1125_s29 = smov (!%p840_p13), %s680_s24  }
 0x1ff   : > { %773 = sbr.rel (%p840_p13) target bundleno = 528 (0x210), region = 135  ;;  %s1129_s30 = smov (!%p840_p13), 0  }
 0x200   : > { %s1133_s6 = smov (!%p840_p13), 0  }
 0x206 LB: >> { %v692_v16 = vld [vmem:[%s1127_s29] sm:$0xff]  ;;  %s694_s18 = sadd.s32 1, %s1131_s30  ;;  %s686_s6 = sadd.s32 1, %s1135_s6   ;;  %s1135_s6 = sphi %s1133_s6, %s686_s6   ;;  %s1131_s30 = sphi %s1129_s30, %s1130_s30   ;;  %s1127_s29 = sphi %s1125_s29, %s699_s29   ;;  %s1123_s28 = sphi %s1121_s28, %s700_s28  }
 0x207   : >> { %693 = vst [vmem:[%s1123_s28] sm:$0xff] %v692_v16  ;;  %p695_p0 = scmp.ge.s32.totalorder %s694_s18, %s1333_s20  ;;  %p685_p1 = scmp.ge.s32.totalorder %s686_s6, %s1333_s20 }
 0x209   : >> { %s1369_s18 = smov (%p695_p0, %s694_s18), 0  ;;  %688 = sbr.rel (!%p685_p1) target bundleno = 518 (0x206), region = 141 }
 0x20a   : >> { %s841_s7 = sshll.u32 %s1369_s18, 3  ;;  %s1130_s30 = smov %s1369_s18  }
 0x20b   : >> { %s699_s29 = scalar_lea.vmem %s680_s24, %s841_s7 [#allocation2]   ;;  %s700_s28 = scalar_lea.vmem %s682_s27, %s841_s7  }
 0x210 PF: > { %p12_p2 = scmp.ge.s32.totalorder %s1182_s22, 6   ;;  %s1361_s18 = smov %s1099_s19 }
 0x211   : > { %s1362_s19 = smov %s1190_s25  ;;  %s1363_s20 = smov %s1182_s22 }
 0x212   :  { %14 = sbr.rel (!%p12_p2) target bundleno = 2 (0x2), region = 152 }

</bundles_post_ra>
